<compile_context>
chip_gen: v5e
topology: v5e:2x2
jax: 0.10.0
libtpu: 0.0.40
codegen_flags: <defaults>
</compile_context>

<pallas_src>
import dataclasses
import functools

import jax
import jax.numpy as jnp
from jax.experimental import pallas as pl
from jax.experimental.pallas import tpu as pltpu


@dataclasses.dataclass
class Config:
    hidden_dim: int = 32
    query_non_linearity: bool = True


def _round_up(x, m):
    return (x + m - 1) // m * m


def _vmem_limit_bytes():
    """Generation-aware VMEM limit: ~3/4 of physical, capped at 96 MiB.
    v7x (64 MiB physical) -> 48 MiB; v5e/v6e (128 MiB) -> 96 MiB."""
    try:
        cap = getattr(pltpu.get_tpu_info(), "vmem_capacity_bytes", None)
        if cap:
            return int(min(cap * 3 // 4, 96 * 1024 * 1024))
    except Exception:
        pass
    return 48 * 1024 * 1024  # conservative default, safe on v7x


def _choose_tiles(B, Lq, Ld_pad, H, direct, in_itemsize, out_itemsize, budget):
    """Pick (Bt, Tl, Tq) that fit `budget` bytes of VMEM, accounting for
    (sublane=8, lane=128) padding (H=32 tiles occupy 128 lanes)."""
    Hp = _round_up(H, 128)

    if Ld_pad <= 128:
        tl_cands = [Ld_pad]
    else:
        tl_cands = [t for t in (4096, 2048, 1024, 512, 256, 128)
                    if t <= Ld_pad and Ld_pad % t == 0] or [Ld_pad]

    if direct and Lq > 128 and Lq % 128 == 0:
        tq_cands = [t for t in (2048, 1024, 512, 256, 128)
                    if t <= Lq and Lq % t == 0] or [Lq]
    else:
        # TODO(synk): masked/padded Lq tiling for very large Lq not a multiple of 128.
        tq_cands = [Lq]

    def block_bytes(bt, tl, tq):
        q_b = bt * _round_up(tq, 8) * Hp * in_itemsize
        d_b = bt * _round_up(tl, 8) * Hp * in_itemsize
        if direct:
            o_b = bt * _round_up(tl, 8) * _round_up(tq, 128) * out_itemsize
        else:
            o_b = bt * _round_up(tq, 8) * _round_up(tl, 128) * out_itemsize
        return 2 * (q_b + d_b + o_b)  # double-buffered pipeline copies

    tl = tl_cands[-1]
    for cand in tl_cands:
        if block_bytes(1, cand, tq_cands[-1]) <= budget:
            tl = cand
            break
    tq = tq_cands[-1]
    for cand in tq_cands:
        if block_bytes(1, tl, cand) <= budget:
            tq = cand
            break
    bt = 1
    for cand in range(2, min(B, 32) + 1):
        if B % cand == 0 and block_bytes(cand, tl, tq) <= budget:
            bt = cand
    return bt, tl, tq


def _sim_proj_kernel(q_ref, d_ref, wt_ref, b_ref, out_ref, *, direct):
    # q_ref : (Bt, Tq, H)   d_ref : (Bt, Tl, H)
    # wt_ref: (H, H) pre-transposed Linear weight so y = x @ wt + b
    # b_ref : (1, H) f32
    # The projection is recomputed on every grid step (cheap at H=32), so there
    # is no cross-step state and all grid axes are safely "parallel".
    bt, tq, h = q_ref.shape
    wt_b = jnp.broadcast_to(wt_ref[...], (bt, h, h))
    qp = jnp.tanh(
        jnp.einsum("bqh,bhk->bqk", q_ref[...], wt_b,
                   preferred_element_type=jnp.float32) + b_ref[...]
    ).astype(d_ref.dtype)
    # TODO(synk): inspect pl.lower_as_mlir for an RHS relayout on the similarity
    # contraction (both operands contract their minor dim); restructure if a
    # vxpose shows up — modest win only, the kernel is HBM-bound at H=32.
    if direct:
        # Final (B, Ld, Lq) layout written directly: no post-kernel swapaxes.
        out_ref[...] = jnp.einsum(
            "blh,bqh->blq", d_ref[...], qp,
            preferred_element_type=jnp.float32).astype(out_ref.dtype)
    else:
        # Small Lq: keep the long document axis lane-dense, swap back in XLA.
        out_ref[...] = jnp.einsum(
            "bqh,blh->bql", qp, d_ref[...],
            preferred_element_type=jnp.float32).astype(out_ref.dtype)


def _sim_noproj_kernel(q_ref, d_ref, out_ref, *, direct):
    if direct:
        out_ref[...] = jnp.einsum(
            "blh,bqh->blq", d_ref[...], q_ref[...],
            preferred_element_type=jnp.float32).astype(out_ref.dtype)
    else:
        out_ref[...] = jnp.einsum(
            "bqh,blh->bql", q_ref[...], d_ref[...],
            preferred_element_type=jnp.float32).astype(out_ref.dtype)


def cosine_similarity(config: Config, question_representation, document_representation,
                      w_proj=None, b_proj=None, out_dtype=None):
    """question_representation: (B, Lq, H); document_representation: (B, Ld, H)
    w_proj: (H, H) torch nn.Linear weight (out x in); b_proj: (H,)
    returns (B, Ld, Lq) = bmm(D, Q'^T), matching the PyTorch module."""
    Q = question_representation
    D = document_representation
    B, Lq, H = Q.shape
    Bd, Ld, Hd = D.shape
    assert H == config.hidden_dim and Hd == H and Bd == B

    if out_dtype is None:
        out_dtype = jnp.result_type(Q.dtype, D.dtype)  # torch.bmm output dtype
    in_itemsize = max(jnp.dtype(Q.dtype).itemsize, jnp.dtype(D.dtype).itemsize)
    out_itemsize = jnp.dtype(out_dtype).itemsize

    # Final-layout output when Lq is lane-dense; otherwise keep Ld on lanes in
    # the kernel and do the (cheap, small-Lq) swap once in XLA.
    direct = Lq >= 128

    # Pad Ld to a multiple of 128 so large, non-divisible Ld still tiles.
    Ld_pad = Ld
    if Ld > 128 and Ld % 128 != 0:
        Ld_pad = _round_up(Ld, 128)
        D = jnp.pad(D, ((0, 0), (0, Ld_pad - Ld), (0, 0)))

    vmem_limit = _vmem_limit_bytes()
    Bt, Tl, Tq = _choose_tiles(B, Lq, Ld_pad, H, direct,
                               in_itemsize, out_itemsize, budget=vmem_limit // 2)
    grid = (B // Bt, Ld_pad // Tl, Lq // Tq)

    q_spec = pl.BlockSpec((Bt, Tq, H), lambda b, l, q: (b, q, 0))
    d_spec = pl.BlockSpec((Bt, Tl, H), lambda b, l, q: (b, l, 0))
    if direct:
        out_shape = jax.ShapeDtypeStruct((B, Ld_pad, Lq), out_dtype)
        out_spec = pl.BlockSpec((Bt, Tl, Tq), lambda b, l, q: (b, l, q))
    else:
        out_shape = jax.ShapeDtypeStruct((B, Lq, Ld_pad), out_dtype)
        out_spec = pl.BlockSpec((Bt, Tq, Tl), lambda b, l, q: (b, q, l))

    cparams = pltpu.CompilerParams(
        dimension_semantics=("parallel", "parallel", "parallel"),
        vmem_limit_bytes=vmem_limit,
    )

    if config.query_non_linearity:
        wt = jnp.asarray(w_proj, dtype=Q.dtype).T              # pre-transpose once in XLA
        bias = jnp.asarray(b_proj, dtype=jnp.float32).reshape(1, H)
        out = pl.pallas_call(
            functools.partial(_sim_proj_kernel, direct=direct),
            out_shape=out_shape,
            grid=grid,
            in_specs=[q_spec, d_spec,
                      pl.BlockSpec((H, H), lambda b, l, q: (0, 0)),
                      pl.BlockSpec((1, H), lambda b, l, q: (0, 0))],
            out_specs=out_spec,
            compiler_params=cparams,
        )(Q, D, wt, bias)
    else:
        out = pl.pallas_call(
            functools.partial(_sim_noproj_kernel, direct=direct),
            out_shape=out_shape,
            grid=grid,
            in_specs=[q_spec, d_spec],
            out_specs=out_spec,
            compiler_params=cparams,
        )(Q, D)

    if not direct:
        out = jnp.swapaxes(out, 1, 2)          # (B, Ld_pad, Lq)
    if Ld_pad != Ld:
        out = out[:, :Ld, :]
    return out


def _reference(config, Q, D, W, b):
    Qx = Q
    if config.query_non_linearity:
        H = config.hidden_dim
        Qx = jnp.tanh(Q.reshape(-1, H) @ W.T + b).reshape(Q.shape)
    return jnp.einsum("bld,bqd->blq", D, Qx)


if __name__ == "__main__":
    H = 32
    key = jax.random.PRNGKey(0)
    kq, kd, kw, kb = jax.random.split(key, 4)
    bound = 1.0 / (H ** 0.5)
    W = jax.random.uniform(kw, (H, H), minval=-bound, maxval=bound, dtype=jnp.float32)
    bvec = jax.random.uniform(kb, (H,), minval=-bound, maxval=bound, dtype=jnp.float32)

    cfg = Config(hidden_dim=H, query_non_linearity=True)
    cfg2 = Config(hidden_dim=H, query_non_linearity=False)

    # 1) Small module-typical shapes (transposed-layout path), with projection.
    B, Lq, Ld = 2, 8, 16
    Q = jax.random.normal(kq, (B, Lq, H), dtype=jnp.float32)
    D = jax.random.normal(kd, (B, Ld, H), dtype=jnp.float32)
    out = jax.block_until_ready(cosine_similarity(cfg, Q, D, W, bvec))
    ref = _reference(cfg, Q, D, W, bvec)
    assert out.shape == (B, Ld, Lq)
    assert jnp.allclose(out, ref, atol=5e-4, rtol=5e-4), "mismatch (proj, small)"

    # 2) Same shapes, no non-linearity.
    out2 = jax.block_until_ready(cosine_similarity(cfg2, Q, D, W, bvec))
    ref2 = _reference(cfg2, Q, D, W, bvec)
    assert out2.shape == (B, Ld, Lq)
    assert jnp.allclose(out2, ref2, atol=5e-4, rtol=5e-4), "mismatch (noproj, small)"

    # 3) Direct-layout path (Lq >= 128) with a non-multiple-of-128 Ld
    #    (exercises Ld padding/slicing and the no-swapaxes output path).
    B3, Lq3, Ld3 = 2, 128, 200
    Q3 = jax.random.normal(kq, (B3, Lq3, H), dtype=jnp.float32)
    D3 = jax.random.normal(kd, (B3, Ld3, H), dtype=jnp.float32)
    out3 = jax.block_until_ready(cosine_similarity(cfg, Q3, D3, W, bvec))
    ref3 = _reference(cfg, Q3, D3, W, bvec)
    assert out3.shape == (B3, Ld3, Lq3)
    assert jnp.allclose(out3, ref3, atol=5e-4, rtol=5e-4), "mismatch (proj, direct)"

    # 4) Direct layout without the projection.
    out4 = jax.block_until_ready(cosine_similarity(cfg2, Q3, D3, W, bvec))
    ref4 = _reference(cfg2, Q3, D3, W, bvec)
    assert out4.shape == (B3, Ld3, Lq3)
    assert jnp.allclose(out4, ref4, atol=5e-4, rtol=5e-4), "mismatch (noproj, direct)"

    print("KERNEL_OK")
</pallas_src>

<mosaic_0001>
module attributes {stable_mosaic.version = 11 : i64} {
  func.func @_sim_proj_kernel(%arg0: i32, %arg1: i32, %arg2: i32, %arg3: memref<2x8x32xf32, #tpu.memory_space<vmem>>, %arg4: memref<2x16x32xf32, #tpu.memory_space<vmem>>, %arg5: memref<32x32xf32, #tpu.memory_space<vmem>>, %arg6: memref<1x32xf32, #tpu.memory_space<vmem>>, %arg7: memref<2x8x16xf32, #tpu.memory_space<vmem>>) attributes {dimension_semantics = [#tpu.dimension_semantics<parallel>, #tpu.dimension_semantics<parallel>, #tpu.dimension_semantics<parallel>], iteration_bounds = array<i64: 1, 1, 1>, scalar_prefetch = 0 : i64, scratch_operands = 0 : i64, tpu.core_type = #tpu.core_type<tc>, window_params = [{transform_indices = @transform_0, window_bounds = array<i64: 2, 8, 32>}, {transform_indices = @transform_1, window_bounds = array<i64: 2, 16, 32>}, {pipeline_mode = #tpu.pipeline_mode<synchronous>, transform_indices = @transform_2, window_bounds = array<i64: 32, 32>}, {pipeline_mode = #tpu.pipeline_mode<synchronous>, transform_indices = @transform_3, window_bounds = array<i64: 1, 32>}, {transform_indices = @transform_4, window_bounds = array<i64: 2, 8, 16>}]} {
    %c0 = arith.constant 0 : index
    %c0_0 = arith.constant 0 : index
    %0 = vector.load %arg5[%c0, %c0_0] : memref<32x32xf32, #tpu.memory_space<vmem>>, vector<32x32xf32>
    %1 = vector.shape_cast %0 : vector<32x32xf32> to vector<1x32x32xf32>
    %2 = vector.broadcast %1 : vector<1x32x32xf32> to vector<2x32x32xf32>
    %c0_1 = arith.constant 0 : index
    %c0_2 = arith.constant 0 : index
    %c0_3 = arith.constant 0 : index
    %3 = vector.load %arg3[%c0_1, %c0_2, %c0_3] : memref<2x8x32xf32, #tpu.memory_space<vmem>>, vector<2x8x32xf32>
    "tpu.trace_start"() <{level = 10 : i32, message = "bqh,bhk->bqk"}> : () -> ()
    %cst = arith.constant dense<0.000000e+00> : vector<2x8x32xf32>
    %4 = tpu.matmul %3, %2, %cst {dimension_numbers = #tpu.dot_dimension_numbers<[2], [1], [1], [2], [0, 0, 0, 1, 1, 2], [0], [0]>} : vector<2x8x32xf32>, vector<2x32x32xf32>, vector<2x8x32xf32> -> vector<2x8x32xf32>
    "tpu.trace_stop"() : () -> ()
    %c0_4 = arith.constant 0 : index
    %c0_5 = arith.constant 0 : index
    %5 = vector.load %arg6[%c0_4, %c0_5] : memref<1x32xf32, #tpu.memory_space<vmem>>, vector<1x32xf32>
    %6 = vector.shape_cast %5 : vector<1x32xf32> to vector<1x1x32xf32>
    %7 = vector.broadcast %6 : vector<1x1x32xf32> to vector<2x8x32xf32>
    %8 = arith.addf %4, %7 : vector<2x8x32xf32>
    %9 = math.tanh %8 : vector<2x8x32xf32>
    %c0_6 = arith.constant 0 : index
    %c0_7 = arith.constant 0 : index
    %c0_8 = arith.constant 0 : index
    %10 = vector.load %arg4[%c0_6, %c0_7, %c0_8] : memref<2x16x32xf32, #tpu.memory_space<vmem>>, vector<2x16x32xf32>
    "tpu.trace_start"() <{level = 10 : i32, message = "bqh,blh->bql"}> : () -> ()
    %cst_9 = arith.constant dense<0.000000e+00> : vector<2x8x16xf32>
    %11 = tpu.matmul %9, %10, %cst_9 {dimension_numbers = #tpu.dot_dimension_numbers<[2], [2], [1], [1], [0, 0, 0, 1, 1, 1], [0], [0]>} : vector<2x8x32xf32>, vector<2x16x32xf32>, vector<2x8x16xf32> -> vector<2x8x16xf32>
    "tpu.trace_stop"() : () -> ()
    %c0_10 = arith.constant 0 : index
    %c0_11 = arith.constant 0 : index
    %c0_12 = arith.constant 0 : index
    %12 = vector.load %arg7[%c0_10, %c0_11, %c0_12] : memref<2x8x16xf32, #tpu.memory_space<vmem>>, vector<2x8x16xf32>
    tpu.vector_store %arg7[%c0_10, %c0_11, %c0_12], %11 {strides = array<i32>} : memref<2x8x16xf32, #tpu.memory_space<vmem>>, vector<2x8x16xf32>,
    return
  }
  func.func @transform_0(%arg0: i32, %arg1: i32, %arg2: i32) -> (i32, i32, i32) {
    %c0_i32 = arith.constant 0 : i32
    %c0_i32_0 = arith.constant 0 : i32
    return %arg0, %arg2, %c0_i32 : i32, i32, i32
  }
  func.func @transform_1(%arg0: i32, %arg1: i32, %arg2: i32) -> (i32, i32, i32) {
    %c0_i32 = arith.constant 0 : i32
    %c0_i32_0 = arith.constant 0 : i32
    return %arg0, %arg1, %c0_i32 : i32, i32, i32
  }
  func.func @transform_2(%arg0: i32, %arg1: i32, %arg2: i32) -> (i32, i32) {
    %c0_i32 = arith.constant 0 : i32
    %c0_i32_0 = arith.constant 0 : i32
    %c0_i32_1 = arith.constant 0 : i32
    return %c0_i32, %c0_i32_0 : i32, i32
  }
  func.func @transform_3(%arg0: i32, %arg1: i32, %arg2: i32) -> (i32, i32) {
    %c0_i32 = arith.constant 0 : i32
    %c0_i32_0 = arith.constant 0 : i32
    %c0_i32_1 = arith.constant 0 : i32
    return %c0_i32, %c0_i32_0 : i32, i32
  }
  func.func @transform_4(%arg0: i32, %arg1: i32, %arg2: i32) -> (i32, i32, i32) {
    %c0_i32 = arith.constant 0 : i32
    return %arg0, %arg2, %arg1 : i32, i32, i32
  }
}

</mosaic_0001>

<bundles_post_ra>
// kernel: tpu_custom_call.1
= control target key start
LH: loop header
LB: loop body
LE: loop exit
PB: predicated region body
PF: predicated region fallthrough
CT: control target
= control target key end

     0   :  { %9 = vsyncpa [#allocation3], 0  ;;  %s396_s0 = inlined_call_operand.hbm [shape: f32[2,8,32], index: 0, kind: input, shape index: {}]   ;;  %s397_s1 = inlined_call_operand.hbm [shape: f32[2,16,32], index: 1, kind: input, shape index: {}]   ;;  %s398_s2 = inlined_call_operand.hbm [shape: f32[32,32], index: 2, kind: input, shape index: {}]   ;;  %s399_s3 = inlined_call_operand.vmem [shape: f32[1,32], index: 3, kind: input, shape index: {}]   ;;  %s400_s4 = inlined_call_operand.hbm [shape: f32[2,8,16], index: 4, kind: output, shape index: {}]  }
   0x1   :  { %10 = vsyncpa [#allocation6], 0 }
   0x2   :  { %11 = vsyncpa [#allocation4], 0  ;;  %s29_s17 = sshll.u32 %s397_s1, 4  ;;  %s330_s18 = smov [#allocation5]   ;;  %s30_s17 = int_to_ptr.hbm [resolvable:$true] %s29_s17 }
   0x3   :  { %s31_s19 = sshll.u32 %s330_s18, 4  ;;  %s16_s22 = sshll.u32 %s396_s0, 4  ;;  %s32_s19 = int_to_ptr.vmem [resolvable:$true] %s31_s19  ;;  %s17_s22 = int_to_ptr.hbm [resolvable:$true] %s16_s22 }
   0x4   :  { %s331_s23 = smov 128   ;;  %s332_s24 = smov 8  }
   0x5   :  { %37 = dma.hbm_to_vmem [thread:$0]  %s30_s17, 512, %s32_s19, [#allocation6], %s331_s23, %s331_s23, %s332_s24  }
   0x6   :  { %s333_s25 = smov [#allocation2]   ;;  %s42_s1 = sshll.u32 %s398_s2, 4  ;;  %s43_s1 = int_to_ptr.hbm [resolvable:$true] %s42_s1 }
   0x7   :  { %s18_s26 = sshll.u32 %s333_s25, 4  ;;  %s334_s0 = smov [#allocation7]   ;;  %s19_s26 = int_to_ptr.vmem [resolvable:$true] %s18_s26 }
   0x8   :  { %24 = dma.hbm_to_vmem [thread:$0]  %s17_s22, 256, %s19_s26, [#allocation3], %s331_s23, %s331_s23, %s332_s24  }
   0x9   :  { %s44_s29 = sshll.u32 %s334_s0, 4  ;;  %s45_s29 = int_to_ptr.vmem [resolvable:$true] %s44_s29 }
   0xa   :  { %50 = dma.hbm_to_vmem [thread:$0]  %s43_s1, 512, %s45_s29, [#allocation6], %s331_s23, %s331_s23, %s332_s24  }
   0xb   :  { %324 = dma.done.wait [#allocation3], 256  }
   0xc   :  { %325 = vsyncadd [#allocation3], 4294967040 }
   0xd   :  { %326 = dma.done.wait [#allocation6], 1024  }
   0xe   :  { %327 = vsyncadd [#allocation6], 4294966272  ;;  %v68_v0 = vld [vmem:[#allocation7 + $0x18] sm:$0xff]  ;;  %v67_v1 = vld [vmem:[#allocation7 + $0x10] sm:$0xff]  ;;  %vm75_vm0 = vcmask 261120   ;;  %s335_s5 = smov [#allocation8]  }
   0xf   :  { %91 = vmatpush.msra.mxu0 %v68_v0  ;;  %114 = vmatpush.msra.mxu1 %v68_v0  ;;  %v66_v2 = vld [vmem:[#allocation7 + $0x8] sm:$0xff]  ;;  %v65_v3 = vld [vmem:[#allocation7] sm:$0xff]  ;;  %v69_v4 = vld [vmem:[#allocation2] sm:$0xff]  ;;  %s193_s6 = sshll.u32 %s335_s5, 4  ;;  %s195_s9 = sshll.u32 %s400_s4, 4  ;;  %vm186_vm1 = vcmask 130048   ;;  %s194_s6 = int_to_ptr.vmem [resolvable:$true] %s193_s6  ;;  %s196_s9 = int_to_ptr.hbm [resolvable:$true] %s195_s9 }
  0x10   :  { %v70_v5 = vld [vmem:[#allocation2 + $0x8] sm:$0xff]  ;;  %v125_v6 = vld [vmem:[#allocation5 + $0x8] sm:$0xff]  ;;  %v124_v8 = vld [vmem:[#allocation5] sm:$0xff] }
  0x11   :  { %92 = vmatpush.msra.mxu0 %v67_v1  ;;  %115 = vmatpush.msra.mxu1 %v67_v1  ;;  %v127_v7 = vld [vmem:[#allocation5 + $0x18] sm:$0xff]  ;;  %v126_v9 = vld [vmem:[#allocation5 + $0x10] sm:$0xff] }
  0x12   :  { %211 = vmatpush.xpose.msk.msra.mxu2 %vm75_vm0, %v125_v6  ;;  %214 = vmatpush.xpose.msk.msra.mxu3 %vm75_vm0, %v127_v7  ;;  %v223_v10 = vld [vmem:[%s399_s3] ss:$0 sm:$0xff] }
  0x13   :  { %93 = vmatpush.msra.mxu0 %v66_v2  ;;  %116 = vmatpush.msra.mxu1 %v66_v2 }
  0x15   :  { %94 = vmatpush.msra.mxu0 %v65_v3  ;;  %117 = vmatpush.msra.mxu1 %v65_v3 }
  0x16   :  { %209 = vmatmul.msk.f32.vlgmr.msra.gmra.mxu0 %vm75_vm0, %v69_v4  ;;  %210 = vmatmul.msk.f32.vlgmr.msra.gmra.mxu1 %vm75_vm0, %v70_v5 }
  0x17   :  { %212 = vmatpush.xpose.msk.msra.mxu2 %vm75_vm0, %v124_v8  ;;  %215 = vmatpush.xpose.msk.msra.mxu3 %vm75_vm0, %v126_v9 }
  0x93   :  { %v96_v11 = vpop.f32.mrf.mxu0  ;;  %v119_v12 = vpop.f32.mrf.mxu1 }
  0x94   :  { %v97_v13 = vadd.f32 %v223_v10, %v96_v11  ;;  %v120_v14 = vadd.f32 %v223_v10, %v119_v12 }
  0x96   :  { %224 = vtanh.f32 %v97_v13 }
  0x97   :  { %226 = vtanh.f32 %v120_v14 }
  0x9c   :  { %v225_v15 = vpop.eup %224 }
  0x9d   :  { %v227_v16 = vpop.eup %226  ;;  %213 = vmatmul.msk.f32.vlgmr.msra.gmra.mxu2 %vm75_vm0, %v225_v15 }
  0x9e   :  { %216 = vmatmul.msk.f32.vlgmr.msra.gmra.mxu3 %vm75_vm0, %v227_v16 }
 0x120   :  { %v154_v17 = vpop.f32.mrf.mxu2 }
 0x121   :  { %187 = vst.msk [vmem:[#allocation8] sm:$0xff] %vm186_vm1, %v154_v17  ;;  %v183_v18 = vpop.f32.mrf.mxu3 }
 0x122   :  { %188 = vst.msk [vmem:[#allocation8 + $0x8] sm:$0xff] %vm186_vm1, %v183_v18 }
 0x123   :  { %201 = dma.vmem_to_hbm [thread:$0]  %s194_s6, 256, %s196_s9, [#allocation4], %s331_s23, %s331_s23, %s332_s24  }
 0x124   :  { %328 = dma.done.wait [#allocation4], 256  }
 0x125   :  { %329 = vsyncadd [#allocation4], 4294967040 }
 0x126   :  { %206 = vsyncpa [#allocation3], 1 }
 0x127   :  { %207 = vsyncpa [#allocation6], 1 }
 0x128   :  { %208 = vsyncpa [#allocation4], 1 }

</bundles_post_ra>
